<compile_context>
chip_gen: v7x
topology: tpu7x:2x2x1
jax: 0.10.0
libtpu: 0.0.40
codegen_flags: <defaults>
</compile_context>

<pallas_src>
import functools

import jax
import jax.numpy as jnp
from jax import lax
from jax.experimental import pallas as pl
from jax.experimental.pallas import tpu as pltpu


def _pool_same_flat(t, col, r, W):
    """Stride-1 'same' max pool of radius r on a channels-major flattened image.

    t   : (C, H*W) float32, non-negative (post-ReLU), row-major spatial.
    col : (1, H*W) int32, column index (w) of each flattened position.
    Zero padding is exactly equivalent to PyTorch's -inf MaxPool padding here
    because every window contains its own non-negative centre element.
    """
    C, HW = t.shape
    dt = t.dtype

    # --- W axis: shift the flattened lane axis by +/-d, mask row crossings.
    zw = jnp.zeros((C, r), dt)
    tw = jnp.concatenate([zw, t, zw], axis=1)              # (C, HW + 2r)
    m = t
    for d in range(1, r + 1):
        right = tw[:, r + d:r + d + HW]                     # t[p + d] (0 past end)
        left = tw[:, r - d:r - d + HW]                      # t[p - d] (0 before start)
        m = jnp.maximum(m, jnp.where(col < W - d, right, 0.0))
        m = jnp.maximum(m, jnp.where(col >= d, left, 0.0))

    # --- H axis: shift by +/-d*W rows; the zero pad is exactly the row padding.
    zh = jnp.zeros((C, r * W), dt)
    th = jnp.concatenate([zh, m, zh], axis=1)               # (C, HW + 2rW)
    out = m
    for d in range(1, r + 1):
        out = jnp.maximum(out, th[:, r * W + d * W:r * W + d * W + HW])
        out = jnp.maximum(out, th[:, r * W - d * W:r * W - d * W + HW])
    return out


def spp_kernel(x_ref, col_ref, w1_ref, b1_ref, w2_ref, b2_ref, o_ref, *, W, radii):
    """One image per grid step; channels-major with H*W on the lane axis."""
    col = col_ref[...]                                      # (1, HW) int32

    # conv1: 1x1 conv (BN scale folded into weights) + bias + ReLU.
    h = jnp.dot(w1_ref[...], x_ref[0],
                preferred_element_type=jnp.float32)         # (Ch, HW) f32
    h = jnp.maximum(h + b1_ref[...], 0.0)

    wdt = w2_ref.dtype
    # Identity branch of the "concat" -> first slice of conv2 (no concat built).
    acc = jnp.dot(w2_ref[0], h.astype(wdt), preferred_element_type=jnp.float32)

    # SPPF cascade: repeated small 'same' pools reproduce pools 5 / 9 / 13.
    cur = h
    for k, r in enumerate(radii):
        cur = _pool_same_flat(cur, col, r, W)
        acc = acc + jnp.dot(w2_ref[k + 1], cur.astype(wdt),
                            preferred_element_type=jnp.float32)

    # conv2: bias + ReLU.
    o_ref[0] = jnp.maximum(acc + b2_ref[...], 0.0).astype(o_ref.dtype)


def spp_bottleneck(x_nchw, params, kernel_sizes=(5, 9, 13),
                   compute_dtype=jnp.float32):
    """SPPBottleneck forward. x_nchw: (N, C, H, W) -> (N, out_channels, H, W)."""
    w1, s1, b1, w2, s2, b2 = params
    N, Cin, H, W = x_nchw.shape
    Ch = w1.shape[1]
    Cout = w2.shape[1]
    nb = 1 + len(kernel_sizes)
    HW = H * W
    assert w2.shape[0] == nb * Ch

    # Incremental radii of the cascade: (5, 9, 13) -> (2, 2, 2), since
    # maxpool_{2a+1} o maxpool_{2b+1} == maxpool_{2(a+b)+1} for stride-1 'same'.
    radii, prev = [], 0
    for ks in kernel_sizes:
        assert ks % 2 == 1 and ks // 2 > prev, "kernel_sizes must be odd, increasing"
        radii.append(ks // 2 - prev)
        prev = ks // 2
    radii = tuple(radii)

    # Fold BN scale into the 1x1-conv weights; transpose to (C_out, C_in) so the
    # matmuls put H*W on the lane axis.  Split conv2's weight per pyramid branch.
    w1t = jnp.transpose(w1 * s1).astype(compute_dtype)                  # (Ch, Cin)
    b1c = jnp.reshape(b1, (Ch, 1)).astype(jnp.float32)
    w2t = jnp.transpose(w2 * s2)                                        # (Cout, nb*Ch)
    w2s = jnp.transpose(jnp.reshape(w2t, (Cout, nb, Ch)), (1, 0, 2))    # (nb, Cout, Ch)
    w2s = w2s.astype(compute_dtype)
    b2c = jnp.reshape(b2, (Cout, 1)).astype(jnp.float32)

    # Free reshapes only (no NCHW<->NHWC HBM round trips).
    x_flat = jnp.reshape(x_nchw, (N, Cin, HW)).astype(compute_dtype)
    col_ids = jnp.tile(jnp.arange(W, dtype=jnp.int32), H).reshape(1, HW)

    kernel = functools.partial(spp_kernel, W=W, radii=radii)
    out_flat = pl.pallas_call(
        kernel,
        out_shape=jax.ShapeDtypeStruct((N, Cout, HW), jnp.float32),
        grid_spec=pltpu.PrefetchScalarGridSpec(
            num_scalar_prefetch=0,
            grid=(N,),
            in_specs=[
                pl.BlockSpec((1, Cin, HW), lambda b: (b, 0, 0)),
                pl.BlockSpec((1, HW), lambda b: (0, 0)),
                pl.BlockSpec((Ch, Cin), lambda b: (0, 0)),
                pl.BlockSpec((Ch, 1), lambda b: (0, 0)),
                pl.BlockSpec((nb, Cout, Ch), lambda b: (0, 0, 0)),
                pl.BlockSpec((Cout, 1), lambda b: (0, 0)),
            ],
            out_specs=pl.BlockSpec((1, Cout, HW), lambda b: (b, 0, 0)),
        ),
        compiler_params=pltpu.CompilerParams(
            dimension_semantics=("parallel",)),
    )(x_flat, col_ids, w1t, b1c, w2s, b2c)

    return jnp.reshape(out_flat, (N, Cout, H, W))


def make_params(key, in_channels, out_channels, kernel_sizes=(5, 9, 13)):
    """Deterministic synthetic weights; BN expressed as (scale, bias)."""
    hidden = in_channels // 2
    c2_in = hidden * (1 + len(kernel_sizes))
    eps = 1e-5
    ks = jax.random.split(key, 10)

    # conv1: PyTorch weight (hidden, in, 1, 1) -> matmul weight (in, hidden)
    w1 = jax.random.normal(ks[0], (in_channels, hidden), jnp.float32) * 0.2
    g1 = 1.0 + 0.1 * jax.random.normal(ks[1], (hidden,), jnp.float32)
    be1 = 0.1 * jax.random.normal(ks[2], (hidden,), jnp.float32)
    mu1 = 0.1 * jax.random.normal(ks[3], (hidden,), jnp.float32)
    var1 = jnp.abs(jax.random.normal(ks[4], (hidden,), jnp.float32)) + 0.5
    s1 = (g1 / jnp.sqrt(var1 + eps)).reshape(1, hidden)
    b1 = (be1 - mu1 * g1 / jnp.sqrt(var1 + eps)).reshape(1, hidden)

    # conv2: PyTorch weight (out, c2_in, 1, 1) -> matmul weight (c2_in, out)
    w2 = jax.random.normal(ks[5], (c2_in, out_channels), jnp.float32) * 0.2
    g2 = 1.0 + 0.1 * jax.random.normal(ks[6], (out_channels,), jnp.float32)
    be2 = 0.1 * jax.random.normal(ks[7], (out_channels,), jnp.float32)
    mu2 = 0.1 * jax.random.normal(ks[8], (out_channels,), jnp.float32)
    var2 = jnp.abs(jax.random.normal(ks[9], (out_channels,), jnp.float32)) + 0.5
    s2 = (g2 / jnp.sqrt(var2 + eps)).reshape(1, out_channels)
    b2 = (be2 - mu2 * g2 / jnp.sqrt(var2 + eps)).reshape(1, out_channels)

    return (w1, s1, b1, w2, s2, b2)


def spp_reference(x_nchw, params, kernel_sizes=(5, 9, 13)):
    """Pure-JAX reference (NHWC internally) mirroring PyTorch semantics."""
    w1, s1, b1, w2, s2, b2 = params
    x = jnp.transpose(x_nchw, (0, 2, 3, 1))
    h = jnp.maximum(jnp.einsum('nhwc,cd->nhwd', x, w1) * s1[0] + b1[0], 0.0)
    feats = [h]
    for ks in kernel_sizes:
        feats.append(lax.reduce_window(
            h, -jnp.inf, lax.max, (1, ks, ks, 1), (1, 1, 1, 1), 'SAME'))
    cat = jnp.concatenate(feats, axis=-1)
    o = jnp.maximum(jnp.einsum('nhwc,cd->nhwd', cat, w2) * s2[0] + b2[0], 0.0)
    return jnp.transpose(o, (0, 3, 1, 2))


if __name__ == "__main__":
    key = jax.random.PRNGKey(0)
    k_x, k_p = jax.random.split(key)

    N, Cin, H, W = 2, 8, 16, 16
    Cout = 8
    kernel_sizes = (5, 9, 13)

    x = jax.random.normal(k_x, (N, Cin, H, W), jnp.float32)
    params = make_params(k_p, Cin, Cout, kernel_sizes)

    ref = spp_reference(x, params, kernel_sizes)

    # f32 path: must match the PyTorch-equivalent reference tightly.
    out = jax.block_until_ready(spp_bottleneck(x, params, kernel_sizes))
    assert out.shape == (N, Cout, H, W)
    assert jnp.allclose(out, ref, atol=1e-4, rtol=1e-4), "f32 mismatch vs reference"

    # bf16 operand path (v6e/v7x): bf16 matmul operands, f32 accumulate/pool.
    out_bf16 = jax.block_until_ready(
        spp_bottleneck(x, params, kernel_sizes, compute_dtype=jnp.bfloat16))
    assert out_bf16.shape == (N, Cout, H, W)
    assert bool(jnp.all(jnp.isfinite(out_bf16)))
    assert float(jnp.mean(jnp.abs(out_bf16 - ref))) < 5e-2, "bf16 path diverged"

    print("KERNEL_OK")
</pallas_src>

<mosaic_0001>
module attributes {stable_mosaic.version = 11 : i64} {
  func.func @spp_kernel(%arg0: i32, %arg1: memref<1x8x256xf32, #tpu.memory_space<vmem>>, %arg2: memref<1x256xi32, #tpu.memory_space<vmem>>, %arg3: memref<4x8xf32, #tpu.memory_space<vmem>>, %arg4: memref<4x1xf32, #tpu.memory_space<vmem>>, %arg5: memref<4x8x4xf32, #tpu.memory_space<vmem>>, %arg6: memref<8x1xf32, #tpu.memory_space<vmem>>, %arg7: memref<1x8x256xf32, #tpu.memory_space<vmem>>) attributes {dimension_semantics = [#tpu.dimension_semantics<parallel>], iteration_bounds = array<i64: 2>, scalar_prefetch = 0 : i64, scratch_operands = 0 : i64, tpu.core_type = #tpu.core_type<tc>, window_params = [{transform_indices = @transform_0, window_bounds = array<i64: 1, 8, 256>}, {pipeline_mode = #tpu.pipeline_mode<synchronous>, transform_indices = @transform_1, window_bounds = array<i64: 1, 256>}, {pipeline_mode = #tpu.pipeline_mode<synchronous>, transform_indices = @transform_2, window_bounds = array<i64: 4, 8>}, {pipeline_mode = #tpu.pipeline_mode<synchronous>, transform_indices = @transform_3, window_bounds = array<i64: 4, 1>}, {pipeline_mode = #tpu.pipeline_mode<synchronous>, transform_indices = @transform_4, window_bounds = array<i64: 4, 8, 4>}, {pipeline_mode = #tpu.pipeline_mode<synchronous>, transform_indices = @transform_5, window_bounds = array<i64: 8, 1>}, {transform_indices = @transform_6, window_bounds = array<i64: 1, 8, 256>}]} {
    %c0 = arith.constant 0 : index
    %c0_0 = arith.constant 0 : index
    %0 = vector.load %arg2[%c0, %c0_0] : memref<1x256xi32, #tpu.memory_space<vmem>>, vector<1x256xi32>
    %c0_1 = arith.constant 0 : index
    %c0_2 = arith.constant 0 : index
    %1 = vector.load %arg3[%c0_1, %c0_2] : memref<4x8xf32, #tpu.memory_space<vmem>>, vector<4x8xf32>
    %c0_3 = arith.constant 0 : index
    %c0_4 = arith.constant 0 : index
    %c0_5 = arith.constant 0 : index
    %2 = vector.load %arg1[%c0_3, %c0_4, %c0_5] : memref<1x8x256xf32, #tpu.memory_space<vmem>>, vector<1x8x256xf32>
    %3 = vector.shape_cast %2 : vector<1x8x256xf32> to vector<8x256xf32>
    %cst = arith.constant dense<0.000000e+00> : vector<4x256xf32>
    %4 = tpu.matmul %1, %3, %cst {dimension_numbers = #tpu.dot_dimension_numbers<[1], [0], [0], [1], [0, 0, 1, 1], [], []>} : vector<4x8xf32>, vector<8x256xf32>, vector<4x256xf32> -> vector<4x256xf32>
    %c0_6 = arith.constant 0 : index
    %c0_7 = arith.constant 0 : index
    %5 = vector.load %arg4[%c0_6, %c0_7] : memref<4x1xf32, #tpu.memory_space<vmem>>, vector<4x1xf32>
    %6 = vector.broadcast %5 : vector<4x1xf32> to vector<4x256xf32>
    %7 = arith.addf %4, %6 : vector<4x256xf32>
    %cst_8 = arith.constant 0.000000e+00 : f32
    %8 = vector.broadcast %cst_8 : f32 to vector<4x256xf32>
    %9 = arith.maximumf %7, %8 : vector<4x256xf32>
    %c0_9 = arith.constant 0 : index
    %c0_10 = arith.constant 0 : index
    %c0_11 = arith.constant 0 : index
    %10 = vector.load %arg5[%c0_9, %c0_10, %c0_11] : memref<4x8x4xf32, #tpu.memory_space<vmem>>, vector<1x8x4xf32>
    %11 = vector.shape_cast %10 : vector<1x8x4xf32> to vector<8x4xf32>
    %cst_12 = arith.constant dense<0.000000e+00> : vector<8x256xf32>
    %12 = tpu.matmul %11, %9, %cst_12 {dimension_numbers = #tpu.dot_dimension_numbers<[1], [0], [0], [1], [0, 0, 1, 1], [], []>} : vector<8x4xf32>, vector<4x256xf32>, vector<8x256xf32> -> vector<8x256xf32>
    %cst_13 = arith.constant 0.000000e+00 : f32
    %13 = vector.broadcast %cst_13 : f32 to vector<4x2xf32>
    %14 = tpu.concatenate %13, %9, %13 in 1 : vector<4x2xf32>, vector<4x256xf32>, vector<4x2xf32> -> vector<4x260xf32>
    %15 = vector.extract_strided_slice %14 {offsets = [0, 3], sizes = [4, 256], strides = [1, 1]} : vector<4x260xf32> to vector<4x256xf32>
    %16 = vector.extract_strided_slice %14 {offsets = [0, 1], sizes = [4, 256], strides = [1, 1]} : vector<4x260xf32> to vector<4x256xf32>
    %c15_i32 = arith.constant 15 : i32
    %17 = vector.broadcast %c15_i32 : i32 to vector<1x256xi32>
    %18 = arith.cmpi slt, %0, %17 : vector<1x256xi32>
    %cst_14 = arith.constant 0.000000e+00 : f32
    %19 = vector.shape_cast %18 : vector<1x256xi1> to vector<1x256xi1>
    %20 = vector.broadcast %19 : vector<1x256xi1> to vector<4x256xi1>
    %21 = vector.broadcast %cst_14 : f32 to vector<4x256xf32>
    %22 = arith.select %20, %15, %21 : vector<4x256xi1>, vector<4x256xf32>
    %23 = arith.maximumf %9, %22 : vector<4x256xf32>
    %c1_i32 = arith.constant 1 : i32
    %24 = vector.broadcast %c1_i32 : i32 to vector<1x256xi32>
    %25 = arith.cmpi sge, %0, %24 : vector<1x256xi32>
    %cst_15 = arith.constant 0.000000e+00 : f32
    %26 = vector.shape_cast %25 : vector<1x256xi1> to vector<1x256xi1>
    %27 = vector.broadcast %26 : vector<1x256xi1> to vector<4x256xi1>
    %28 = vector.broadcast %cst_15 : f32 to vector<4x256xf32>
    %29 = arith.select %27, %16, %28 : vector<4x256xi1>, vector<4x256xf32>
    %30 = arith.maximumf %23, %29 : vector<4x256xf32>
    %31 = vector.extract_strided_slice %14 {offsets = [0, 4], sizes = [4, 256], strides = [1, 1]} : vector<4x260xf32> to vector<4x256xf32>
    %32 = vector.extract_strided_slice %14 {offsets = [0, 0], sizes = [4, 256], strides = [1, 1]} : vector<4x260xf32> to vector<4x256xf32>
    %c14_i32 = arith.constant 14 : i32
    %33 = vector.broadcast %c14_i32 : i32 to vector<1x256xi32>
    %34 = arith.cmpi slt, %0, %33 : vector<1x256xi32>
    %cst_16 = arith.constant 0.000000e+00 : f32
    %35 = vector.shape_cast %34 : vector<1x256xi1> to vector<1x256xi1>
    %36 = vector.broadcast %35 : vector<1x256xi1> to vector<4x256xi1>
    %37 = vector.broadcast %cst_16 : f32 to vector<4x256xf32>
    %38 = arith.select %36, %31, %37 : vector<4x256xi1>, vector<4x256xf32>
    %39 = arith.maximumf %30, %38 : vector<4x256xf32>
    %c2_i32 = arith.constant 2 : i32
    %40 = vector.broadcast %c2_i32 : i32 to vector<1x256xi32>
    %41 = arith.cmpi sge, %0, %40 : vector<1x256xi32>
    %cst_17 = arith.constant 0.000000e+00 : f32
    %42 = vector.shape_cast %41 : vector<1x256xi1> to vector<1x256xi1>
    %43 = vector.broadcast %42 : vector<1x256xi1> to vector<4x256xi1>
    %44 = vector.broadcast %cst_17 : f32 to vector<4x256xf32>
    %45 = arith.select %43, %32, %44 : vector<4x256xi1>, vector<4x256xf32>
    %46 = arith.maximumf %39, %45 : vector<4x256xf32>
    %cst_18 = arith.constant 0.000000e+00 : f32
    %47 = vector.broadcast %cst_18 : f32 to vector<4x32xf32>
    %48 = tpu.concatenate %47, %46, %47 in 1 : vector<4x32xf32>, vector<4x256xf32>, vector<4x32xf32> -> vector<4x320xf32>
    %49 = vector.extract_strided_slice %48 {offsets = [0, 48], sizes = [4, 256], strides = [1, 1]} : vector<4x320xf32> to vector<4x256xf32>
    %50 = arith.maximumf %46, %49 : vector<4x256xf32>
    %51 = vector.extract_strided_slice %48 {offsets = [0, 16], sizes = [4, 256], strides = [1, 1]} : vector<4x320xf32> to vector<4x256xf32>
    %52 = arith.maximumf %50, %51 : vector<4x256xf32>
    %53 = vector.extract_strided_slice %48 {offsets = [0, 64], sizes = [4, 256], strides = [1, 1]} : vector<4x320xf32> to vector<4x256xf32>
    %54 = arith.maximumf %52, %53 : vector<4x256xf32>
    %55 = vector.extract_strided_slice %48 {offsets = [0, 0], sizes = [4, 256], strides = [1, 1]} : vector<4x320xf32> to vector<4x256xf32>
    %56 = arith.maximumf %54, %55 : vector<4x256xf32>
    %c1 = arith.constant 1 : index
    %c0_19 = arith.constant 0 : index
    %c0_20 = arith.constant 0 : index
    %57 = vector.load %arg5[%c1, %c0_19, %c0_20] : memref<4x8x4xf32, #tpu.memory_space<vmem>>, vector<1x8x4xf32>
    %58 = vector.shape_cast %57 : vector<1x8x4xf32> to vector<8x4xf32>
    %cst_21 = arith.constant dense<0.000000e+00> : vector<8x256xf32>
    %59 = tpu.matmul %58, %56, %cst_21 {dimension_numbers = #tpu.dot_dimension_numbers<[1], [0], [0], [1], [0, 0, 1, 1], [], []>} : vector<8x4xf32>, vector<4x256xf32>, vector<8x256xf32> -> vector<8x256xf32>
    %60 = arith.addf %12, %59 : vector<8x256xf32>
    %cst_22 = arith.constant 0.000000e+00 : f32
    %61 = vector.broadcast %cst_22 : f32 to vector<4x2xf32>
    %62 = tpu.concatenate %61, %56, %61 in 1 : vector<4x2xf32>, vector<4x256xf32>, vector<4x2xf32> -> vector<4x260xf32>
    %63 = vector.extract_strided_slice %62 {offsets = [0, 3], sizes = [4, 256], strides = [1, 1]} : vector<4x260xf32> to vector<4x256xf32>
    %64 = vector.extract_strided_slice %62 {offsets = [0, 1], sizes = [4, 256], strides = [1, 1]} : vector<4x260xf32> to vector<4x256xf32>
    %c15_i32_23 = arith.constant 15 : i32
    %65 = vector.broadcast %c15_i32_23 : i32 to vector<1x256xi32>
    %66 = arith.cmpi slt, %0, %65 : vector<1x256xi32>
    %cst_24 = arith.constant 0.000000e+00 : f32
    %67 = vector.shape_cast %66 : vector<1x256xi1> to vector<1x256xi1>
    %68 = vector.broadcast %67 : vector<1x256xi1> to vector<4x256xi1>
    %69 = vector.broadcast %cst_24 : f32 to vector<4x256xf32>
    %70 = arith.select %68, %63, %69 : vector<4x256xi1>, vector<4x256xf32>
    %71 = arith.maximumf %56, %70 : vector<4x256xf32>
    %c1_i32_25 = arith.constant 1 : i32
    %72 = vector.broadcast %c1_i32_25 : i32 to vector<1x256xi32>
    %73 = arith.cmpi sge, %0, %72 : vector<1x256xi32>
    %cst_26 = arith.constant 0.000000e+00 : f32
    %74 = vector.shape_cast %73 : vector<1x256xi1> to vector<1x256xi1>
    %75 = vector.broadcast %74 : vector<1x256xi1> to vector<4x256xi1>
    %76 = vector.broadcast %cst_26 : f32 to vector<4x256xf32>
    %77 = arith.select %75, %64, %76 : vector<4x256xi1>, vector<4x256xf32>
    %78 = arith.maximumf %71, %77 : vector<4x256xf32>
    %79 = vector.extract_strided_slice %62 {offsets = [0, 4], sizes = [4, 256], strides = [1, 1]} : vector<4x260xf32> to vector<4x256xf32>
    %80 = vector.extract_strided_slice %62 {offsets = [0, 0], sizes = [4, 256], strides = [1, 1]} : vector<4x260xf32> to vector<4x256xf32>
    %c14_i32_27 = arith.constant 14 : i32
    %81 = vector.broadcast %c14_i32_27 : i32 to vector<1x256xi32>
    %82 = arith.cmpi slt, %0, %81 : vector<1x256xi32>
    %cst_28 = arith.constant 0.000000e+00 : f32
    %83 = vector.shape_cast %82 : vector<1x256xi1> to vector<1x256xi1>
    %84 = vector.broadcast %83 : vector<1x256xi1> to vector<4x256xi1>
    %85 = vector.broadcast %cst_28 : f32 to vector<4x256xf32>
    %86 = arith.select %84, %79, %85 : vector<4x256xi1>, vector<4x256xf32>
    %87 = arith.maximumf %78, %86 : vector<4x256xf32>
    %c2_i32_29 = arith.constant 2 : i32
    %88 = vector.broadcast %c2_i32_29 : i32 to vector<1x256xi32>
    %89 = arith.cmpi sge, %0, %88 : vector<1x256xi32>
    %cst_30 = arith.constant 0.000000e+00 : f32
    %90 = vector.shape_cast %89 : vector<1x256xi1> to vector<1x256xi1>
    %91 = vector.broadcast %90 : vector<1x256xi1> to vector<4x256xi1>
    %92 = vector.broadcast %cst_30 : f32 to vector<4x256xf32>
    %93 = arith.select %91, %80, %92 : vector<4x256xi1>, vector<4x256xf32>
    %94 = arith.maximumf %87, %93 : vector<4x256xf32>
    %cst_31 = arith.constant 0.000000e+00 : f32
    %95 = vector.broadcast %cst_31 : f32 to vector<4x32xf32>
    %96 = tpu.concatenate %95, %94, %95 in 1 : vector<4x32xf32>, vector<4x256xf32>, vector<4x32xf32> -> vector<4x320xf32>
    %97 = vector.extract_strided_slice %96 {offsets = [0, 48], sizes = [4, 256], strides = [1, 1]} : vector<4x320xf32> to vector<4x256xf32>
    %98 = arith.maximumf %94, %97 : vector<4x256xf32>
    %99 = vector.extract_strided_slice %96 {offsets = [0, 16], sizes = [4, 256], strides = [1, 1]} : vector<4x320xf32> to vector<4x256xf32>
    %100 = arith.maximumf %98, %99 : vector<4x256xf32>
    %101 = vector.extract_strided_slice %96 {offsets = [0, 64], sizes = [4, 256], strides = [1, 1]} : vector<4x320xf32> to vector<4x256xf32>
    %102 = arith.maximumf %100, %101 : vector<4x256xf32>
    %103 = vector.extract_strided_slice %96 {offsets = [0, 0], sizes = [4, 256], strides = [1, 1]} : vector<4x320xf32> to vector<4x256xf32>
    %104 = arith.maximumf %102, %103 : vector<4x256xf32>
    %c2 = arith.constant 2 : index
    %c0_32 = arith.constant 0 : index
    %c0_33 = arith.constant 0 : index
    %105 = vector.load %arg5[%c2, %c0_32, %c0_33] : memref<4x8x4xf32, #tpu.memory_space<vmem>>, vector<1x8x4xf32>
    %106 = vector.shape_cast %105 : vector<1x8x4xf32> to vector<8x4xf32>
    %cst_34 = arith.constant dense<0.000000e+00> : vector<8x256xf32>
    %107 = tpu.matmul %106, %104, %cst_34 {dimension_numbers = #tpu.dot_dimension_numbers<[1], [0], [0], [1], [0, 0, 1, 1], [], []>} : vector<8x4xf32>, vector<4x256xf32>, vector<8x256xf32> -> vector<8x256xf32>
    %108 = arith.addf %60, %107 : vector<8x256xf32>
    %cst_35 = arith.constant 0.000000e+00 : f32
    %109 = vector.broadcast %cst_35 : f32 to vector<4x2xf32>
    %110 = tpu.concatenate %109, %104, %109 in 1 : vector<4x2xf32>, vector<4x256xf32>, vector<4x2xf32> -> vector<4x260xf32>
    %111 = vector.extract_strided_slice %110 {offsets = [0, 3], sizes = [4, 256], strides = [1, 1]} : vector<4x260xf32> to vector<4x256xf32>
    %112 = vector.extract_strided_slice %110 {offsets = [0, 1], sizes = [4, 256], strides = [1, 1]} : vector<4x260xf32> to vector<4x256xf32>
    %c15_i32_36 = arith.constant 15 : i32
    %113 = vector.broadcast %c15_i32_36 : i32 to vector<1x256xi32>
    %114 = arith.cmpi slt, %0, %113 : vector<1x256xi32>
    %cst_37 = arith.constant 0.000000e+00 : f32
    %115 = vector.shape_cast %114 : vector<1x256xi1> to vector<1x256xi1>
    %116 = vector.broadcast %115 : vector<1x256xi1> to vector<4x256xi1>
    %117 = vector.broadcast %cst_37 : f32 to vector<4x256xf32>
    %118 = arith.select %116, %111, %117 : vector<4x256xi1>, vector<4x256xf32>
    %119 = arith.maximumf %104, %118 : vector<4x256xf32>
    %c1_i32_38 = arith.constant 1 : i32
    %120 = vector.broadcast %c1_i32_38 : i32 to vector<1x256xi32>
    %121 = arith.cmpi sge, %0, %120 : vector<1x256xi32>
    %cst_39 = arith.constant 0.000000e+00 : f32
    %122 = vector.shape_cast %121 : vector<1x256xi1> to vector<1x256xi1>
    %123 = vector.broadcast %122 : vector<1x256xi1> to vector<4x256xi1>
    %124 = vector.broadcast %cst_39 : f32 to vector<4x256xf32>
    %125 = arith.select %123, %112, %124 : vector<4x256xi1>, vector<4x256xf32>
    %126 = arith.maximumf %119, %125 : vector<4x256xf32>
    %127 = vector.extract_strided_slice %110 {offsets = [0, 4], sizes = [4, 256], strides = [1, 1]} : vector<4x260xf32> to vector<4x256xf32>
    %128 = vector.extract_strided_slice %110 {offsets = [0, 0], sizes = [4, 256], strides = [1, 1]} : vector<4x260xf32> to vector<4x256xf32>
    %c14_i32_40 = arith.constant 14 : i32
    %129 = vector.broadcast %c14_i32_40 : i32 to vector<1x256xi32>
    %130 = arith.cmpi slt, %0, %129 : vector<1x256xi32>
    %cst_41 = arith.constant 0.000000e+00 : f32
    %131 = vector.shape_cast %130 : vector<1x256xi1> to vector<1x256xi1>
    %132 = vector.broadcast %131 : vector<1x256xi1> to vector<4x256xi1>
    %133 = vector.broadcast %cst_41 : f32 to vector<4x256xf32>
    %134 = arith.select %132, %127, %133 : vector<4x256xi1>, vector<4x256xf32>
    %135 = arith.maximumf %126, %134 : vector<4x256xf32>
    %c2_i32_42 = arith.constant 2 : i32
    %136 = vector.broadcast %c2_i32_42 : i32 to vector<1x256xi32>
    %137 = arith.cmpi sge, %0, %136 : vector<1x256xi32>
    %cst_43 = arith.constant 0.000000e+00 : f32
    %138 = vector.shape_cast %137 : vector<1x256xi1> to vector<1x256xi1>
    %139 = vector.broadcast %138 : vector<1x256xi1> to vector<4x256xi1>
    %140 = vector.broadcast %cst_43 : f32 to vector<4x256xf32>
    %141 = arith.select %139, %128, %140 : vector<4x256xi1>, vector<4x256xf32>
    %142 = arith.maximumf %135, %141 : vector<4x256xf32>
    %cst_44 = arith.constant 0.000000e+00 : f32
    %143 = vector.broadcast %cst_44 : f32 to vector<4x32xf32>
    %144 = tpu.concatenate %143, %142, %143 in 1 : vector<4x32xf32>, vector<4x256xf32>, vector<4x32xf32> -> vector<4x320xf32>
    %145 = vector.extract_strided_slice %144 {offsets = [0, 48], sizes = [4, 256], strides = [1, 1]} : vector<4x320xf32> to vector<4x256xf32>
    %146 = arith.maximumf %142, %145 : vector<4x256xf32>
    %147 = vector.extract_strided_slice %144 {offsets = [0, 16], sizes = [4, 256], strides = [1, 1]} : vector<4x320xf32> to vector<4x256xf32>
    %148 = arith.maximumf %146, %147 : vector<4x256xf32>
    %149 = vector.extract_strided_slice %144 {offsets = [0, 64], sizes = [4, 256], strides = [1, 1]} : vector<4x320xf32> to vector<4x256xf32>
    %150 = arith.maximumf %148, %149 : vector<4x256xf32>
    %151 = vector.extract_strided_slice %144 {offsets = [0, 0], sizes = [4, 256], strides = [1, 1]} : vector<4x320xf32> to vector<4x256xf32>
    %152 = arith.maximumf %150, %151 : vector<4x256xf32>
    %c3 = arith.constant 3 : index
    %c0_45 = arith.constant 0 : index
    %c0_46 = arith.constant 0 : index
    %153 = vector.load %arg5[%c3, %c0_45, %c0_46] : memref<4x8x4xf32, #tpu.memory_space<vmem>>, vector<1x8x4xf32>
    %154 = vector.shape_cast %153 : vector<1x8x4xf32> to vector<8x4xf32>
    %cst_47 = arith.constant dense<0.000000e+00> : vector<8x256xf32>
    %155 = tpu.matmul %154, %152, %cst_47 {dimension_numbers = #tpu.dot_dimension_numbers<[1], [0], [0], [1], [0, 0, 1, 1], [], []>} : vector<8x4xf32>, vector<4x256xf32>, vector<8x256xf32> -> vector<8x256xf32>
    %156 = arith.addf %108, %155 : vector<8x256xf32>
    %c0_48 = arith.constant 0 : index
    %c0_49 = arith.constant 0 : index
    %157 = vector.load %arg6[%c0_48, %c0_49] : memref<8x1xf32, #tpu.memory_space<vmem>>, vector<8x1xf32>
    %158 = vector.broadcast %157 : vector<8x1xf32> to vector<8x256xf32>
    %159 = arith.addf %156, %158 : vector<8x256xf32>
    %cst_50 = arith.constant 0.000000e+00 : f32
    %160 = vector.broadcast %cst_50 : f32 to vector<8x256xf32>
    %161 = arith.maximumf %159, %160 : vector<8x256xf32>
    %c0_51 = arith.constant 0 : index
    %c0_52 = arith.constant 0 : index
    %c0_53 = arith.constant 0 : index
    %162 = vector.load %arg7[%c0_51, %c0_52, %c0_53] : memref<1x8x256xf32, #tpu.memory_space<vmem>>, vector<1x8x256xf32>
    %163 = vector.shape_cast %162 : vector<1x8x256xf32> to vector<8x256xf32>
    %164 = vector.shape_cast %161 : vector<8x256xf32> to vector<1x8x256xf32>
    tpu.vector_store %arg7[%c0_51, %c0_52, %c0_53], %164 {strides = array<i32>} : memref<1x8x256xf32, #tpu.memory_space<vmem>>, vector<1x8x256xf32>,
    return
  }
  func.func @transform_0(%arg0: i32) -> (i32, i32, i32) {
    %c0_i32 = arith.constant 0 : i32
    %c0_i32_0 = arith.constant 0 : i32
    %c0_i32_1 = arith.constant 0 : i32
    return %arg0, %c0_i32, %c0_i32_0 : i32, i32, i32
  }
  func.func @transform_1(%arg0: i32) -> (i32, i32) {
    %c0_i32 = arith.constant 0 : i32
    %c0_i32_0 = arith.constant 0 : i32
    %c0_i32_1 = arith.constant 0 : i32
    return %c0_i32, %c0_i32_0 : i32, i32
  }
  func.func @transform_2(%arg0: i32) -> (i32, i32) {
    %c0_i32 = arith.constant 0 : i32
    %c0_i32_0 = arith.constant 0 : i32
    %c0_i32_1 = arith.constant 0 : i32
    return %c0_i32, %c0_i32_0 : i32, i32
  }
  func.func @transform_3(%arg0: i32) -> (i32, i32) {
    %c0_i32 = arith.constant 0 : i32
    %c0_i32_0 = arith.constant 0 : i32
    %c0_i32_1 = arith.constant 0 : i32
    return %c0_i32, %c0_i32_0 : i32, i32
  }
  func.func @transform_4(%arg0: i32) -> (i32, i32, i32) {
    %c0_i32 = arith.constant 0 : i32
    %c0_i32_0 = arith.constant 0 : i32
    %c0_i32_1 = arith.constant 0 : i32
    %c0_i32_2 = arith.constant 0 : i32
    return %c0_i32, %c0_i32_0, %c0_i32_1 : i32, i32, i32
  }
  func.func @transform_5(%arg0: i32) -> (i32, i32) {
    %c0_i32 = arith.constant 0 : i32
    %c0_i32_0 = arith.constant 0 : i32
    %c0_i32_1 = arith.constant 0 : i32
    return %c0_i32, %c0_i32_0 : i32, i32
  }
  func.func @transform_6(%arg0: i32) -> (i32, i32, i32) {
    %c0_i32 = arith.constant 0 : i32
    %c0_i32_0 = arith.constant 0 : i32
    %c0_i32_1 = arith.constant 0 : i32
    return %arg0, %c0_i32, %c0_i32_0 : i32, i32, i32
  }
}

</mosaic_0001>

<bundles_post_ra>
// kernel: tpu_custom_call.1
= control target key start
LH: loop header
LB: loop body
LE: loop exit
PB: predicated region body
PF: predicated region fallthrough
CT: control target
= control target key end

     0   :  { %11 = vsyncpa [#allocation3], 0  ;;  %s1708_s0 = inlined_call_operand.vmem [shape: f32[2,8,256], index: 0, kind: input, shape index: {}]   ;;  %s1709_s1 = inlined_call_operand.vmem [shape: s32[1,256], index: 1, kind: input, shape index: {}]   ;;  %s1710_s2 = inlined_call_operand.vmem [shape: f32[4,8], index: 2, kind: input, shape index: {}]   ;;  %s1711_s3 = inlined_call_operand.vmem [shape: f32[4,1], index: 3, kind: input, shape index: {}]   ;;  %s1712_s4 = inlined_call_operand.vmem [shape: f32[4,8,4], index: 4, kind: input, shape index: {}]   ;;  %s1713_s5 = inlined_call_operand.vmem [shape: f32[8,1], index: 5, kind: input, shape index: {}]   ;;  %s1714_s6 = inlined_call_operand.hbm [shape: f32[2,8,256], index: 6, kind: output, shape index: {}]  }
   0x1   :  { %13 = vsyncpa [#allocation3 + $0x1], 0  ;;  %s1339_s21 = smov 0   ;;  %s1341_s22 = smov 0  }
   0x2   :  { %s1343_s23 = smov 0   ;;  %s1345_s24 = smov 0  }
   0x3 LB: > { %s1360_s25 = sadd.s32 4294967295, %s1291_s24   ;;  %s1142_s26 = sadd.s32 4294967294, %s1291_s24   ;;  %s1291_s24 = sphi %s1345_s24, %s1755_s24   ;;  %s1287_s23 = sphi %s1343_s23, %s1754_s23   ;;  %s1283_s22 = sphi %s1341_s22, %s1753_s22   ;;  %s1279_s21 = sphi %s1339_s21, %s1752_s21  }
   0x4   : > { %s1364_s27 = sadd.s32 1, %s1291_s24   ;;  %s157_s28 = sadd.s32 1, %s1287_s23 }
   0x5   : > { %s154_s29 = ssub.s32 %s1291_s24, %s1364_s27  ;;  %p167_p0 = scmp.ne.s32.totalorder %s1287_s23, %s1283_s22 }
   0x6   : > { %p155_p1 = scmp.eq.s32.totalorder %s154_s29, 0  ;;  %p168_p2 = scmp.eq.s32.totalorder %s1360_s25, 1 }
   0x7   : > { %p173_p3 = scmp.ne.s32.totalorder %s1283_s22, %s1279_s21  ;;  %p174_p4 = scmp.eq.s32.totalorder %s1142_s26, 1 }
   0x8   : > { %s1375_s30 = scalar_select %p155_p1, %s1287_s23, %s157_s28  }
   0x9   : > { %p1377_p5 = por %p168_p2, %p167_p0  ;;  %p1381_p6 = por %p174_p4, %p173_p3 }
   0xa   : > { %p1145_p7 = scmp.ge.s32.totalorder %s1291_s24, 1  ;;  %p215_p8 = scmp.lt.s32.totalorder %s1291_s24, 3 }
   0xc   : > { %p216_p9 = pnand %p1145_p7, %p215_p8 }
   0xd   : > { %p245_p10 = scmp.lt.s32.totalorder (!%p216_p9), %s1360_s25, 1  ;;  %v1293_v0 = vmov (!%p216_p9), 0.0   ;;  %v1294_v1 = vmov (!%p216_p9), 0   ;;  %v254_v2 = vld [vmem:[%s1711_s3] sm:$0xf] (!%p216_p9)  ;;  %vm260_vm0 = vcmask (!%p216_p9), 64512   ;;  %v353_v18 = vlaneseq (!%p216_p9) }
   0xe   : > { %219 = sbr.rel (%p216_p9) target bundleno = 1985 (0x7c1), region = 44  ;;  %328 = vmatprep.mubr.f32.mxu0 (!%p216_p9), %v1293_v0  ;;  %1227 = vset.pattern.permute.xlu0 (!%p216_p9), %v1294_v1  ;;  %v251_v5 = vld [vmem:[%s1710_s2] sm:$0xf] (!%p216_p9)  ;;  %vm1719_vm1 = vcmask (!%p216_p9), 1043456   ;;  %s1295_s18 = smov (!%p216_p9), 2   ;;  %vm344_vm2 = vcmask (!%p216_p9), 15360  }
   0xf   : > { %257 = vperm.xlu0 (!%p216_p9), %1227, %v254_v2   ;;  %661 = vmatprep.mubr.f32.mxu1 (!%p216_p9), %v1293_v0  ;;  %s1296_s19 = smov (!%p216_p9), 127   ;;  %s1297_s20 = smov (!%p216_p9), 125   ;;  %v250_v19 = vld [vmem:[%s1709_s1] sm:$0x3] (!%p216_p9)  ;;  %v354_v20 = vshrl.u32 (!%p216_p9), %v353_v18, 7  ;;  %vm1718_vm6 = vcmask (!%p216_p9), 1022976  }
  0x10   : > { %1228 = vset.pattern.permute.xlu1 (!%p216_p9), %v1294_v1  ;;  %s1298_s26 = smov (!%p216_p9), 124   ;;  %vm351_vm3 = vcmp.lt.s32.totalorder (!%p216_p9), %v250_v19, 15  ;;  %vm380_vm4 = vcmp.ge.s32.totalorder (!%p216_p9), %v250_v19, 1  ;;  %vm407_vm5 = vcmp.lt.s32.totalorder (!%p216_p9), %v250_v19, 14  ;;  %vm434_vm7 = vcmp.ge.s32.totalorder (!%p216_p9), %v250_v19, 2  ;;  %s1299_s9 = smov (!%p216_p9), 32  }
  0x11   : > { %v352_v23 = vsel (!%p216_p9), %vm351_vm3, 1, %v1294_v1  ;;  %v355_v24 = vsub.s32 (!%p216_p9), 0, %v354_v20  ;;  %v359_v26 = vsub.s32 (!%p216_p9), 1, %v354_v20  ;;  %v381_v29 = vsel (!%p216_p9), %vm380_vm4, 1, %v1294_v1  ;;  %s1300_s10 = smov (!%p216_p9), 80   ;;  %v1157_v61 = vld [vmem:[%s1712_s4 + $0x10] sm:$0xff] (!%p216_p9) }
  0x12   : > { %v408_v31 = vsel (!%p216_p9), %vm407_vm5, 1, %v1294_v1  ;;  %v435_v39 = vsel (!%p216_p9), %vm434_vm7, 1, %v1294_v1  ;;  %vm1716_vm10 = vcmask (!%p216_p9), 1039360   ;;  %vm1717_vm11 = vcmask (!%p216_p9), 1014784   ;;  %s242_s29 = sand.u32 (!%p216_p9), 1, %s1283_s22  }
  0x13   : > { %v356_v25 = vrot.slane (!%p216_p9), %v352_v23, %v355_v24  ;;  %v360_v30 = vrot.slane (!%p216_p9), %v352_v23, %v359_v26  ;;  %v385_v34 = vrot.slane (!%p216_p9), %v381_v29, %v355_v24  ;;  %v389_v35 = vrot.slane (!%p216_p9), %v381_v29, %v359_v26  ;;  %s1069_s16 = scalar_lea.sflag (!%p216_p9), [#allocation3], %s242_s29 }
  0x14   : > { %v412_v38 = vrot.slane (!%p216_p9), %v408_v31, %v355_v24  ;;  %v416_v45 = vrot.slane (!%p216_p9), %v408_v31, %v359_v26  ;;  %v439_v46 = vrot.slane (!%p216_p9), %v435_v39, %v355_v24  ;;  %v443_v51 = vrot.slane (!%p216_p9), %v435_v39, %v359_v26 }
  0x15   : > { %s246_s11 = scalar_select %p245_p10, %s1360_s25, 1  ;;  %vm1443_vm8 = vcmp.eq.s32.totalorder %v356_v25, 1  ;;  %vm1449_vm9 = vcmp.eq.s32.totalorder %v360_v30, 1  ;;  %vm1456_vm12 = vcmp.eq.s32.totalorder %v385_v34, 1  ;;  %vm1460_vm13 = vcmp.eq.s32.totalorder %v389_v35, 1 }
  0x16   : > { %vm1466_vm14 = vcmp.eq.s32.totalorder %v412_v38, 1  ;;  %vm1479_vm15 = vcmp.eq.s32.totalorder %v416_v45, 1  ;;  %vm1490_vm3 = vcmp.eq.s32.totalorder %v443_v51, 1  ;;  %vm1715_vm4 = vcmask 261120  }
  0x17   : > { %s1170_s12 = sshll.u32 %s246_s11, 4  ;;  %s1301_s11 = smov 112   ;;  %vm471_vm5 = vcmask 654336   ;;  %vm484_vm7 = vcmask 916480  }
  0x18   : > { %s249_s15 = scalar_lea.vmem %s1708_s0, %s1170_s12  ;;  %s1302_s12 = smov 64  }
  0x19   : > { %v253_v3 = vld [vmem:[%s249_s15 + $0x8] sm:$0xff]  ;;  %v252_v4 = vld [vmem:[%s249_s15] sm:$0xff] }
  0x1a   : > { %264 = vmatprep.subr.mxu0 %v253_v3 }
  0x1b   : > { %265 = vmatpush1.msra.mxu0 %v252_v4 }
  0x1c   : > { %1149 = vmatmul.mubr.msk.f32.vlgmr.msra.gmra.mrb[0].mxu0 %vm260_vm0, %v251_v5  ;;  %vm1483_vm0 = vcmp.eq.s32.totalorder %v439_v46, 1 }
  0x1d   : > { %583 = vmatprep.mubr.f32.mxu0 %v1293_v0 }
  0x8e   : > { %v258_v6 = vpop.permute.xlu0 %257 }
  0xef   : > { %v330_v7 = vpop.f32.mrb[0].mxu0 }
  0xf0   : > { %v331_v8 = vadd.f32 %v330_v7, %v258_v6  ;;  %v332_v9 = vpop.f32.mrb[1].mxu0 }
  0xf1   : > { %v333_v10 = vadd.f32 %v332_v9, %v258_v6 }
  0xf2   : > { %v1403_v11 = vmax.f32 %v331_v8, 0.0 }
  0xf3   : > { %v1405_v12 = vmax.f32 %v333_v10, 0.0 }
  0xf4   : > { %340 = vrot.lane.b32.xlu0 %v1403_v11, %s1295_s18 }
  0xf5   : > { %342 = vrot.lane.b32.xlu1 %v1405_v12, %s1295_s18  ;;  %1154 = vmatprep.subr.msk.mxu1 %vm1719_vm1, %v1405_v12 }
  0xf6   : > { %1155 = vmatpush1.msk.msra.mxu1 %vm1719_vm1, %v1403_v11 }
 0x166   : > { %v341_v13 = vpop.permute.xlu0 %340 }
 0x167   : > { %v1416_v14 = vsel %vm344_vm2, 0.0, %v341_v13  ;;  %v343_v15 = vpop.permute.xlu1 %342 }
 0x168   : > { %392 = vrot.lane.b32.xlu0 %v1416_v14, %s1296_s19  ;;  %365 = vrot.lane.b32.xlu1 %v1416_v14, %s1297_s20  ;;  %v1423_v16 = vsel %vm344_vm2, %v341_v13, %v343_v15  ;;  %v350_v17 = vsel %vm344_vm2, %v343_v15, 0.0  ;;  %v446_v6 = vsel %vm1483_vm0, %v1416_v14, 0.0 }
 0x169   : > { %v447_v9 = vsel %vm1490_vm3, %v1423_v16, 0.0 }
 0x16c   : > { %419 = vrot.lane.b32.xlu1 %v1416_v14, %s1298_s26  ;;  %367 = vrot.lane.b32.xlu0 %v1423_v16, %s1297_s20 }
 0x170   : > { %369 = vrot.lane.b32.xlu1 %v350_v17, %s1297_s20  ;;  %396 = vrot.lane.b32.xlu0 %v350_v17, %s1296_s19 }
 0x174   : > { %394 = vrot.lane.b32.xlu1 %v1423_v16, %s1296_s19  ;;  %421 = vrot.lane.b32.xlu0 %v1423_v16, %s1298_s26 }
 0x178   : > { %423 = vrot.lane.b32.xlu1 %v350_v17, %s1298_s26 }
 0x1da   : > { %v393_v21 = vpop.permute.xlu0 %392  ;;  %v366_v22 = vpop.permute.xlu1 %365 }
 0x1de   : > { %v420_v27 = vpop.permute.xlu1 %419  ;;  %v368_v28 = vpop.permute.xlu0 %367 }
 0x1df   : > { %v372_v33 = vsel %vm1718_vm6, %v366_v22, %v368_v28 }
 0x1e0   : > { %v376_v42 = vsel %vm1443_vm8, %v372_v33, 0.0 }
 0x1e1   : > { %v378_v52 = vmax.f32 %v1403_v11, %v376_v42 }
 0x1e2   : > { %v370_v36 = vpop.permute.xlu1 %369  ;;  %v397_v37 = vpop.permute.xlu0 %396 }
 0x1e3   : > { %v373_v41 = vsel %vm1718_vm6, %v368_v28, %v370_v36 }
 0x1e4   : > { %v377_v47 = vsel %vm1449_vm9, %v373_v41, 0.0 }
 0x1e5   : > { %v379_v58 = vmax.f32 %v1405_v12, %v377_v47 }
 0x1e6   : > { %v395_v48 = vpop.permute.xlu1 %394  ;;  %v422_v50 = vpop.permute.xlu0 %421 }
 0x1e7   : > { %v399_v53 = vsel %vm1716_vm10, %v393_v21, %v395_v48  ;;  %v400_v54 = vsel %vm1716_vm10, %v395_v48, %v397_v37  ;;  %v426_v55 = vsel %vm1717_vm11, %v420_v27, %v422_v50 }
 0x1e8   : > { %v403_v56 = vsel %vm1456_vm12, %v399_v53, 0.0  ;;  %v404_v57 = vsel %vm1460_vm13, %v400_v54, 0.0  ;;  %v430_v62 = vsel %vm1466_vm14, %v426_v55, 0.0 }
 0x1e9   : > { %v405_v59 = vmax.f32 %v378_v52, %v403_v56  ;;  %v406_v1 = vmax.f32 %v379_v58, %v404_v57 }
 0x1ea   : > { %v424_v63 = vpop.permute.xlu1 %423 }
 0x1eb   : > { %v432_v2 = vmax.f32 %v405_v59, %v430_v62  ;;  %v427_v3 = vsel %vm1717_vm11, %v422_v50, %v424_v63 }
 0x1ec   : > { %v431_v5 = vsel %vm1479_vm15, %v427_v3, 0.0 }
 0x1ed   : > { %v433_v7 = vmax.f32 %v406_v1, %v431_v5  ;;  %v448_v8 = vmax.f32 %v432_v2, %v446_v6 }
 0x1ef   : > { %452 = vrot.lane.b32.xlu0 %v448_v8, %s1299_s9  ;;  %v449_v10 = vmax.f32 %v433_v7, %v447_v9 }
 0x1f1   : > { %454 = vrot.lane.b32.xlu1 %v449_v10, %s1299_s9 }
 0x261   : > { %v453_v11 = vpop.permute.xlu0 %452 }
 0x262   : > { %v461_v12 = vsel %vm1715_vm4, 0.0, %v453_v11 }
 0x263   : > { %465 = vrot.lane.b32.xlu0 %v461_v12, %s1300_s10  ;;  %v455_v13 = vpop.permute.xlu1 %454 }
 0x264   : > { %v457_v14 = vsel %vm1715_vm4, %v453_v11, %v455_v13  ;;  %v462_v15 = vsel %vm1715_vm4, %v455_v13, 0.0  ;;  %vm497_vm4 = vcmask 523264  }
 0x265   : > { %467 = vrot.lane.b32.xlu1 %v457_v14, %s1300_s10 }
 0x267   : > { %469 = vrot.lane.b32.xlu0 %v462_v15, %s1300_s10 }
 0x269   : > { %478 = vrot.lane.b32.xlu1 %v461_v12, %s1301_s11 }
 0x26b   : > { %480 = vrot.lane.b32.xlu0 %v457_v14, %s1301_s11 }
 0x26d   : > { %482 = vrot.lane.b32.xlu1 %v462_v15, %s1301_s11 }
 0x26f   : > { %491 = vrot.lane.b32.xlu0 %v461_v12, %s1302_s12 }
 0x271   : > { %493 = vrot.lane.b32.xlu1 %v457_v14, %s1302_s12 }
 0x273   : > { %495 = vrot.lane.b32.xlu0 %v462_v15, %s1302_s12 }
 0x2d5   : > { %v466_v16 = vpop.permute.xlu0 %465 }
 0x2d7   : > { %v468_v17 = vpop.permute.xlu1 %467 }
 0x2d8   : > { %v472_v21 = vsel %vm471_vm5, %v466_v16, %v468_v17 }
 0x2d9   : > { %v470_v18 = vpop.permute.xlu0 %469  ;;  %v476_v25 = vmax.f32 %v448_v8, %v472_v21 }
 0x2da   : > { %v473_v23 = vsel %vm471_vm5, %v468_v17, %v470_v18 }
 0x2db   : > { %v479_v19 = vpop.permute.xlu1 %478  ;;  %v477_v28 = vmax.f32 %v449_v10, %v473_v23 }
 0x2dd   : > { %v481_v20 = vpop.permute.xlu0 %480 }
 0x2de   : > { %v485_v24 = vsel %vm484_vm7, %v479_v19, %v481_v20 }
 0x2df   : > { %v483_v22 = vpop.permute.xlu1 %482  ;;  %v489_v29 = vmax.f32 %v476_v25, %v485_v24  ;;  %v337_v25 = vld [vmem:[%s1712_s4] sm:$0xff] }
 0x2e0   : > { %v486_v27 = vsel %vm484_vm7, %v481_v20, %v483_v22 }
 0x2e1   : > { %v492_v26 = vpop.permute.xlu0 %491  ;;  %v490_v33 = vmax.f32 %v477_v28, %v486_v27 }
 0x2e3   : > { %v494_v30 = vpop.permute.xlu1 %493 }
 0x2e4   : > { %v498_v31 = vsel %vm497_vm4, %v492_v26, %v494_v30 }
 0x2e5   : > { %v502_v34 = vmax.f32 %v489_v29, %v498_v31  ;;  %v496_v35 = vpop.permute.xlu0 %495 }
 0x2e6   : > { %v499_v36 = vsel %vm497_vm4, %v494_v30, %v496_v35 }
 0x2e7   : > { %v503_v37 = vmax.f32 %v490_v33, %v499_v36  ;;  %v504_v38 = vmax.f32 %v502_v34, %v461_v12 }
 0x2e9   : > { %668 = vrot.lane.b32.xlu1 %v504_v38, %s1295_s18  ;;  %v505_v39 = vmax.f32 %v503_v37, %v457_v14 }
 0x2eb   : > { %670 = vrot.lane.b32.xlu0 %v505_v39, %s1295_s18  ;;  %1151 = vmatprep.subr.msk.mxu0 %vm1719_vm1, %v505_v39 }
 0x2ec   : > { %1152 = vmatpush1.msk.msra.mxu0 %vm1719_vm1, %v504_v38 }
 0x35b   : > { %v669_v41 = vpop.permute.xlu1 %668 }
 0x35c   : > { %v676_v42 = vsel %vm344_vm2, 0.0, %v669_v41 }
 0x35d   : > { %v671_v45 = vpop.permute.xlu0 %670  ;;  %680 = vrot.lane.b32.xlu1 %v676_v42, %s1297_s20  ;;  %v722_v15 = vsel %vm1483_vm0, %v676_v42, 0.0 }
 0x35e   : > { %v672_v46 = vsel %vm344_vm2, %v669_v41, %v671_v45  ;;  %v677_v47 = vsel %vm344_vm2, %v671_v45, 0.0 }
 0x35f   : > { %682 = vrot.lane.b32.xlu0 %v672_v46, %s1297_s20  ;;  %v723_v18 = vsel %vm1490_vm3, %v672_v46, 0.0 }
 0x361   : > { %684 = vrot.lane.b32.xlu1 %v677_v47, %s1297_s20 }
 0x363   : > { %694 = vrot.lane.b32.xlu0 %v676_v42, %s1296_s19 }
 0x365   : > { %696 = vrot.lane.b32.xlu1 %v672_v46, %s1296_s19 }
 0x367   : > { %698 = vrot.lane.b32.xlu0 %v677_v47, %s1296_s19 }
 0x369   : > { %708 = vrot.lane.b32.xlu1 %v676_v42, %s1298_s26 }
 0x36b   : > { %710 = vrot.lane.b32.xlu0 %v672_v46, %s1298_s26 }
 0x36d   : > { %712 = vrot.lane.b32.xlu1 %v677_v47, %s1298_s26 }
 0x3cf   : > { %v681_v48 = vpop.permute.xlu1 %680 }
 0x3d1   : > { %v683_v50 = vpop.permute.xlu0 %682 }
 0x3d2   : > { %v686_v53 = vsel %vm1718_vm6, %v681_v48, %v683_v50 }
 0x3d3   : > { %v685_v51 = vpop.permute.xlu1 %684  ;;  %v690_v57 = vsel %vm1443_vm8, %v686_v53, 0.0 }
 0x3d4   : > { %v687_v55 = vsel %vm1718_vm6, %v683_v50, %v685_v51  ;;  %v692_v2 = vmax.f32 %v504_v38, %v690_v57 }
 0x3d5   : > { %v695_v52 = vpop.permute.xlu0 %694  ;;  %v691_v62 = vsel %vm1449_vm9, %v687_v55, 0.0 }
 0x3d6   : > { %v693_v6 = vmax.f32 %v505_v39, %v691_v62 }
 0x3d7   : > { %v697_v54 = vpop.permute.xlu1 %696 }
 0x3d8   : > { %v700_v56 = vsel %vm1716_vm10, %v695_v52, %v697_v54 }
 0x3d9   : > { %v699_v58 = vpop.permute.xlu0 %698  ;;  %v704_v63 = vsel %vm1456_vm12, %v700_v56, 0.0 }
 0x3da   : > { %v701_v59 = vsel %vm1716_vm10, %v697_v54, %v699_v58  ;;  %v706_v7 = vmax.f32 %v692_v2, %v704_v63  ;;  %vm1738_vm10 = vcmask 261120  }
 0x3db   : > { %v709_v1 = vpop.permute.xlu1 %708  ;;  %v705_v3 = vsel %vm1460_vm13, %v701_v59, 0.0  ;;  %vm1740_vm6 = vmmov %vm1738_vm10 }
 0x3dc   : > { %v707_v11 = vmax.f32 %v693_v6, %v705_v3 }
 0x3dd   : > { %v711_v5 = vpop.permute.xlu0 %710 }
 0x3de   : > { %v714_v8 = vsel %vm1717_vm11, %v709_v1, %v711_v5 }
 0x3df   : > { %v718_v9 = vsel %vm1466_vm14, %v714_v8, 0.0  ;;  %v713_v10 = vpop.permute.xlu1 %712 }
 0x3e0   : > { %v720_v12 = vmax.f32 %v706_v7, %v718_v9  ;;  %v715_v13 = vsel %vm1717_vm11, %v711_v5, %v713_v10  ;;  %vm1739_vm11 = vmmov %vm1738_vm10 }
 0x3e1   : > { %v719_v14 = vsel %vm1479_vm15, %v715_v13, 0.0 }
 0x3e2   : > { %v721_v16 = vmax.f32 %v707_v11, %v719_v14  ;;  %v724_v17 = vmax.f32 %v720_v12, %v722_v15 }
 0x3e4   : > { %728 = vrot.lane.b32.xlu0 %v724_v17, %s1299_s9  ;;  %v725_v19 = vmax.f32 %v721_v16, %v723_v18 }
 0x3e6   : > { %730 = vrot.lane.b32.xlu1 %v725_v19, %s1299_s9 }
 0x456   : > { %v729_v20 = vpop.permute.xlu0 %728 }
 0x457   : > { %v736_v21 = vsel %vm1738_vm10, 0.0, %v729_v20  ;;  %vm508_vm10 = vcmask 31744  }
 0x458   : > { %740 = vrot.lane.b32.xlu0 %v736_v21, %s1300_s10  ;;  %v731_v22 = vpop.permute.xlu1 %730  ;;  %1156 = vmatmul.mubr.msk.f32.vlgmr.msra.gmra.mrb[0].mxu1 %vm508_vm10, %v337_v25 }
 0x459   : > { %v732_v23 = vsel %vm1739_vm11, %v729_v20, %v731_v22  ;;  %v737_v24 = vsel %vm1740_vm6, %v731_v22, 0.0  ;;  %853 = vmatprep.mubr.f32.mxu1 %v1293_v0  ;;  %vm1741_vm6 = vcmask 1022976   ;;  %vm1743_vm11 = vcmask 1039360  }
 0x45a   : > { %742 = vrot.lane.b32.xlu1 %v732_v23, %s1300_s10 }
 0x45c   : > { %744 = vrot.lane.b32.xlu0 %v737_v24, %s1300_s10 }
 0x45e   : > { %752 = vrot.lane.b32.xlu1 %v736_v21, %s1301_s11 }
 0x460   : > { %754 = vrot.lane.b32.xlu0 %v732_v23, %s1301_s11 }
 0x462   : > { %756 = vrot.lane.b32.xlu1 %v737_v24, %s1301_s11 }
 0x464   : > { %764 = vrot.lane.b32.xlu0 %v736_v21, %s1302_s12 }
 0x466   : > { %766 = vrot.lane.b32.xlu1 %v732_v23, %s1302_s12 }
 0x468   : > { %768 = vrot.lane.b32.xlu0 %v737_v24, %s1302_s12 }
 0x4ca   : > { %v741_v26 = vpop.permute.xlu0 %740 }
 0x4cc   : > { %v743_v27 = vpop.permute.xlu1 %742 }
 0x4cd   : > { %v746_v31 = vsel %vm471_vm5, %v741_v26, %v743_v27 }
 0x4ce   : > { %v745_v28 = vpop.permute.xlu0 %744  ;;  %v750_v36 = vmax.f32 %v724_v17, %v746_v31 }
 0x4cf   : > { %v747_v34 = vsel %vm471_vm5, %v743_v27, %v745_v28  ;;  %v1150_v28 = vld [vmem:[%s1712_s4 + $0x8] sm:$0xff] }
 0x4d0   : > { %v753_v29 = vpop.permute.xlu1 %752  ;;  %v751_v39 = vmax.f32 %v725_v19, %v747_v34  ;;  %1153 = vmatmul.mubr.msk.f32.vlgmr.msra.gmra.mrb[2].mxu0 %vm508_vm10, %v1150_v28 }
 0x4d2   : > { %v755_v30 = vpop.permute.xlu0 %754 }
 0x4d3   : > { %v758_v35 = vsel %vm484_vm7, %v753_v29, %v755_v30 }
 0x4d4   : > { %v757_v33 = vpop.permute.xlu1 %756  ;;  %v762_v41 = vmax.f32 %v750_v36, %v758_v35 }
 0x4d5   : > { %v759_v38 = vsel %vm484_vm7, %v755_v30, %v757_v33 }
 0x4d6   : > { %v765_v37 = vpop.permute.xlu0 %764  ;;  %v763_v46 = vmax.f32 %v751_v39, %v759_v38 }
 0x4d8   : > { %v767_v42 = vpop.permute.xlu1 %766 }
 0x4d9   : > { %v770_v45 = vsel %vm497_vm4, %v765_v37, %v767_v42 }
 0x4da   : > { %v774_v47 = vmax.f32 %v762_v41, %v770_v45  ;;  %v769_v48 = vpop.permute.xlu0 %768 }
 0x4db   : > { %v771_v50 = vsel %vm497_vm4, %v767_v42, %v769_v48 }
 0x4dc   : > { %v775_v51 = vmax.f32 %v763_v46, %v771_v50  ;;  %v776_v52 = vmax.f32 %v774_v47, %v736_v21 }
 0x4de   : > { %862 = vrot.lane.b32.xlu1 %v776_v52, %s1295_s18  ;;  %v777_v53 = vmax.f32 %v775_v51, %v732_v23 }
 0x4e0   : > { %864 = vrot.lane.b32.xlu0 %v777_v53, %s1295_s18  ;;  %1158 = vmatprep.subr.msk.mxu1 %vm1719_vm1, %v777_v53 }
 0x4e1   : > { %1159 = vmatpush1.msk.msra.mxu1 %vm1719_vm1, %v776_v52  ;;  %vm1744_vm1 = vmmov %vm1743_vm11 }
 0x4e2   : > { %1160 = vmatmul.mubr.msk.f32.vlgmr.msra.gmra.mrb[0].mxu1 %vm508_vm10, %v1157_v61 }
 0x4e3   : > { %1047 = vmatprep.mubr.f32.mxu1 %v1293_v0  ;;  %v1056_v0 = vld [vmem:[%s1713_s5] sm:$0xff] }
 0x550   : > { %v863_v54 = vpop.permute.xlu1 %862 }
 0x551   : > { %v870_v55 = vsel %vm344_vm2, 0.0, %v863_v54 }
 0x552   : > { %v865_v56 = vpop.permute.xlu0 %864  ;;  %874 = vrot.lane.b32.xlu1 %v870_v55, %s1297_s20  ;;  %v916_v44 = vsel %vm1483_vm0, %v870_v55, 0.0 }
 0x553   : > { %v866_v57 = vsel %vm344_vm2, %v863_v54, %v865_v56  ;;  %v871_v58 = vsel %vm344_vm2, %v865_v56, 0.0  ;;  %vm1742_vm2 = vmmov %vm1741_vm6 }
 0x554   : > { %876 = vrot.lane.b32.xlu0 %v866_v57, %s1297_s20  ;;  %v917_v24 = vsel %vm1490_vm3, %v866_v57, 0.0 }
 0x556   : > { %878 = vrot.lane.b32.xlu1 %v871_v58, %s1297_s20 }
 0x558   : > { %888 = vrot.lane.b32.xlu0 %v870_v55, %s1296_s19 }
 0x55a   : > { %890 = vrot.lane.b32.xlu1 %v866_v57, %s1296_s19 }
 0x55c   : > { %892 = vrot.lane.b32.xlu0 %v871_v58, %s1296_s19 }
 0x55e   : > { %902 = vrot.lane.b32.xlu1 %v870_v55, %s1298_s26 }
 0x560   : > { %904 = vrot.lane.b32.xlu0 %v866_v57, %s1298_s26  ;;  %v1161_v57 = vld [vmem:[%s1712_s4 + $0x18] sm:$0xff] }
 0x562   : > { %906 = vrot.lane.b32.xlu1 %v871_v58, %s1298_s26 }
 0x5a3   : > { %v585_v58 = vpop.f32.mrb[2].mxu0 }
 0x5c4   : > { %v875_v59 = vpop.permute.xlu1 %874 }
 0x5c6   : > { %v877_v62 = vpop.permute.xlu0 %876 }
 0x5c7   : > { %v880_v2 = vsel %vm1741_vm6, %v875_v59, %v877_v62  ;;  %vm1745_vm6 = vcmask 1014784   ;;  %v587_v59 = vpop.f32.mrb[3].mxu0 }
 0x5c8   : > { %v879_v63 = vpop.permute.xlu1 %878  ;;  %v884_v7 = vsel %vm1443_vm8, %v880_v2, 0.0  ;;  %vm1747_vm8 = vcmask 261120  }
 0x5c9   : > { %v881_v5 = vsel %vm1742_vm2, %v877_v62, %v879_v63  ;;  %v886_v13 = vmax.f32 %v776_v52, %v884_v7 }
 0x5ca   : > { %v889_v1 = vpop.permute.xlu0 %888  ;;  %v885_v10 = vsel %vm1449_vm9, %v881_v5, 0.0  ;;  %vm1748_vm9 = vmmov %vm1747_vm8 }
 0x5cb   : > { %v887_v16 = vmax.f32 %v777_v53, %v885_v10 }
 0x5cc   : > { %v891_v3 = vpop.permute.xlu1 %890 }
 0x5cd   : > { %v894_v6 = vsel %vm1743_vm11, %v889_v1, %v891_v3 }
 0x5ce   : > { %v893_v8 = vpop.permute.xlu0 %892  ;;  %v898_v11 = vsel %vm1456_vm12, %v894_v6, 0.0  ;;  %vm1749_vm12 = vmmov %vm1747_vm8 }
 0x5cf   : > { %v895_v9 = vsel %vm1744_vm1, %v891_v3, %v893_v8  ;;  %v900_v17 = vmax.f32 %v886_v13, %v898_v11  ;;  %vm1746_vm1 = vmmov %vm1745_vm6 }
 0x5d0   : > { %v903_v12 = vpop.permute.xlu1 %902  ;;  %v899_v14 = vsel %vm1460_vm13, %v895_v9, 0.0  ;;  %vm1750_vm13 = vcmask 1043456  }
 0x5d1   : > { %v901_v20 = vmax.f32 %v887_v16, %v899_v14 }
 0x5d2   : > { %v905_v15 = vpop.permute.xlu0 %904 }
 0x5d3   : > { %v908_v32 = vsel %vm1745_vm6, %v903_v12, %v905_v15 }
 0x5d4   : > { %v912_v18 = vsel %vm1466_vm14, %v908_v32, 0.0  ;;  %v907_v19 = vpop.permute.xlu1 %906  ;;  %vm1751_vm14 = vmmov %vm1750_vm13 }
 0x5d5   : > { %v914_v40 = vmax.f32 %v900_v17, %v912_v18  ;;  %v909_v21 = vsel %vm1746_vm1, %v905_v15, %v907_v19 }
 0x5d6   : > { %v913_v43 = vsel %vm1479_vm15, %v909_v21, 0.0 }
 0x5d7   : > { %v915_v22 = vmax.f32 %v901_v20, %v913_v43  ;;  %v918_v23 = vmax.f32 %v914_v40, %v916_v44 }
 0x5d9   : > { %922 = vrot.lane.b32.xlu0 %v918_v23, %s1299_s9  ;;  %v919_v49 = vmax.f32 %v915_v22, %v917_v24 }
 0x5db   : > { %924 = vrot.lane.b32.xlu1 %v919_v49, %s1299_s9  ;;  %s1146_s9 = sshll.u32 %s242_s29, 4 }
 0x64b   : > { %v923_v25 = vpop.permute.xlu0 %922 }
 0x64c   : > { %v930_v4 = vsel %vm1749_vm12, 0.0, %v923_v25 }
 0x64d   : > { %v925_v26 = vpop.permute.xlu1 %924 }
 0x64e   : > { %v926_v27 = vsel %vm1747_vm8, %v923_v25, %v925_v26  ;;  %v931_v60 = vsel %vm1748_vm9, %v925_v26, 0.0 }
 0x64f   : > { %938 = vrot.lane.b32.xlu1 %v931_v60, %s1300_s10  ;;  %936 = vrot.lane.b32.xlu0 %v926_v27, %s1300_s10 }
 0x653   : > { %948 = vrot.lane.b32.xlu1 %v926_v27, %s1301_s11  ;;  %934 = vrot.lane.b32.xlu0 %v930_v4, %s1300_s10  ;;  %s1171_s10 = sshll.u32 %s1360_s25, 8  ;;  %s1303_s25 = smov [#allocation2]  }
 0x654   : > { %s1666_s15 = scalar_lea.hbm %s1714_s6, %s1171_s10  ;;  %s1233_s18 = sshll.u32 %s1303_s25, 4  ;;  %s1234_s18 = int_to_ptr.vmem [resolvable:$false] %s1233_s18 }
 0x655   : > { %s1235_s19 = scalar_lea.vmem %s1234_s18, 512 }
 0x657   : > { %946 = vrot.lane.b32.xlu1 %v930_v4, %s1301_s11  ;;  %950 = vrot.lane.b32.xlu0 %v931_v60, %s1301_s11  ;;  %s244_s11 = scalar_lea.vmem [#allocation2], %s1146_s9 }
 0x65b   : > { %962 = vrot.lane.b32.xlu1 %v931_v60, %s1302_s12  ;;  %960 = vrot.lane.b32.xlu0 %v926_v27, %s1302_s12 }
 0x65f   : > { %958 = vrot.lane.b32.xlu0 %v930_v4, %s1302_s12  ;;  %1059 = vperm.xlu1 %1228, %v1056_v0   ;;  %s1083_s12 = sshll.u32 %s244_s11, 4  ;;  %s1668_s12 = int_to_ptr.vmem [resolvable:$true] %s1083_s12 }
 0x660   : > { %s1229_s17 = scalar_lea.vmem %s1668_s12, 256  ;;  %p1236_p0 = scmp.lt.s32.totalorder %s1668_s12, %s1234_s18 }
 0x661   : > { %p1230_p11 = scmp.ne.s32.totalorder %s1668_s12, %s1229_s17  ;;  %p1237_p1 = scmp.lt.s32.totalorder %s1235_s19, %s1229_s17 }
 0x663   : > { %p1231_p12 = pnand %p1230_p11, %p1377_p5  ;;  %p1238_p2 = por %p1237_p1, %p1236_p0 }
 0x665   : > { %p1232_p13 = pneg %p1231_p12 }
 0x667   : > { %p1239_p3 = pnand %p1238_p2, %p1232_p13 }
 0x6c1   : > { %v939_v29 = vpop.permute.xlu1 %938  ;;  %v937_v30 = vpop.permute.xlu0 %936 }
 0x6c2   : > { %v941_v34 = vsel %vm471_vm5, %v937_v30, %v939_v29 }
 0x6c3   : > { %v945_v38 = vmax.f32 %v919_v49, %v941_v34 }
 0x6c5   : > { %v949_v31 = vpop.permute.xlu1 %948  ;;  %v935_v33 = vpop.permute.xlu0 %934 }
 0x6c6   : > { %v940_v39 = vsel %vm471_vm5, %v935_v33, %v937_v30 }
 0x6c7   : > { %v944_v48 = vmax.f32 %v918_v23, %v940_v39 }
 0x6c9   : > { %v947_v35 = vpop.permute.xlu1 %946  ;;  %v951_v36 = vpop.permute.xlu0 %950 }
 0x6ca   : > { %v953_v37 = vsel %vm484_vm7, %v949_v31, %v951_v36  ;;  %v952_v46 = vsel %vm484_vm7, %v947_v35, %v949_v31 }
 0x6cb   : > { %v957_v41 = vmax.f32 %v945_v38, %v953_v37  ;;  %v956_v51 = vmax.f32 %v944_v48, %v952_v46 }
 0x6cd   : > { %v963_v42 = vpop.permute.xlu1 %962  ;;  %v961_v45 = vpop.permute.xlu0 %960 }
 0x6ce   : > { %v965_v47 = vsel %vm497_vm4, %v961_v45, %v963_v42 }
 0x6cf   : > { %v969_v50 = vmax.f32 %v957_v41, %v965_v47 }
 0x6d1   : > { %v971_v52 = vmax.f32 %v969_v50, %v926_v27  ;;  %v959_v53 = vpop.permute.xlu0 %958 }
 0x6d2   : > { %v964_v54 = vsel %vm497_vm4, %v959_v53, %v961_v45 }
 0x6d3   : > { %v968_v55 = vmax.f32 %v956_v51, %v964_v54  ;;  %1162 = vmatprep.subr.msk.mxu1 %vm1750_vm13, %v971_v52 }
 0x6d5   : > { %v970_v56 = vmax.f32 %v968_v55, %v930_v4 }
 0x6d7   : > { %1163 = vmatpush1.msk.msra.mxu1 %vm1751_vm14, %v970_v56 }
 0x6d8   : > { %1164 = vmatmul.mubr.msk.f32.vlgmr.msra.gmra.mrb[0].mxu1 %vm508_vm10, %v1161_v57 }
 0x6de   : > { %v1060_v63 = vpop.permute.xlu1 %1059 }
 0x7ab   : > { %v1049_v62 = vpop.f32.mrb[0].mxu1 }
 0x7ac   : > { %v1172_v1 = vadd.f32 %v1049_v62, %v585_v58  ;;  %v1051_v2 = vpop.f32.mrb[1].mxu1 }
 0x7ad   : > { %v1173_v3 = vadd.f32 %v1051_v2, %v587_v59 }
 0x7ae   : > { %v1062_v5 = vadd.f32 %v1172_v1, %v1060_v63 }
 0x7af   : > { %v1063_v6 = vadd.f32 %v1173_v3, %v1060_v63 }
 0x7b0   : > { %v1064_v7 = vmax.f32 %v1062_v5, 0.0 }
 0x7b1   : > { %v1065_v8 = vmax.f32 %v1063_v6, 0.0 }
 0x7b2   : > { %1066 = vst [vmem:[%s244_s11] sm:$0xff] %v1064_v7 }
 0x7b3   : > { %1067 = vst [vmem:[%s244_s11 + $0x8] sm:$0xff] %v1065_v8 }
 0x7b4   : > { %1242 = shalt.err (!%p1239_p3)
}
 0x7b5   : > { %s1243_s20 = scalar_lea.hbm %s1666_s15, 256  ;;  %s1247_s29 = scalar_lea.hbm %s1714_s6, 512 }
 0x7b6   : > { %p1244_p4 = scmp.ne.s32.totalorder %s1666_s15, %s1243_s20  ;;  %p1248_p9 = scmp.lt.u32.totalorder %s1666_s15, %s1714_s6 }
 0x7b7   : > { %p1249_p10 = scmp.lt.u32.totalorder %s1247_s29, %s1243_s20  ;;  %p1251_p12 = scmp.lt.u32.totalorder %s1243_s20, %s1666_s15 }
 0x7b8   : > { %p1245_p7 = pnand %p1244_p4, %p1377_p5 }
 0x7b9   : > { %p1250_p11 = por %p1249_p10, %p1248_p9 }
 0x7ba   : > { %p1246_p8 = pneg %p1245_p7 }
 0x7bb   : > { %p1252_p13 = por %p1251_p12, %p1250_p11 }
 0x7bd   : > { %p1253_p0 = pnand %p1252_p13, %p1246_p8 }
 0x7bf   : > { %1256 = shalt.err (!%p1253_p0)
}
 0x7c0   : > { %1178 = dma.vmem_to_hbm [thread:$0]  (%p1377_p5), %s1668_s12, 256, %s1666_s15, %s1069_s16  }
 0x7c1 PF: > { %p1184_p1 = scmp.ge.s32.totalorder %s1291_s24, 2  ;;  %s1095_s11 = sand.u32 1, %s1279_s21  }
 0x7c2   : > { %s1096_s13 = scalar_lea.sflag [#allocation3], %s1095_s11 }
 0x7c3   : > { %p1181_p2 = pnand %p1184_p1, %p1381_p6 }
 0x7c5   : > { %1274 = dma.done.wait (!%p1181_p2), %s1096_s13, 256  }
 0x7c6   : > { %1276 = vsyncadd (!%p1181_p2), %s1096_s13, 4294967040  ;;  %p16_p3 = scmp.ge.s32.totalorder %s1364_s27, 4   ;;  %s1752_s21 = smov %s1283_s22 }
 0x7c7   : > { %s1753_s22 = smov %s1287_s23  ;;  %s1754_s23 = smov %s1375_s30 }
 0x7c8   : > { %s1755_s24 = smov %s1364_s27  ;;  %18 = sbr.rel (!%p16_p3) target bundleno = 3 (0x3), region = 82 }
 0x7cf   :  { %1101 = vsyncpa [#allocation3], 1 }
 0x7d0   :  { %1103 = vsyncpa [#allocation3 + $0x1], 1 }

</bundles_post_ra>
